<compile_context>
chip_gen: v5e
topology: v5e:2x2
jax: 0.10.0
libtpu: 0.0.40
codegen_flags: <defaults>
</compile_context>

<pallas_src>
import math
from functools import partial

import jax
import jax.numpy as jnp
from jax.experimental import pallas as pl
from jax.experimental.pallas import tpu as pltpu

OP = 128  # lane-dense padded output width (output_dim is padded up to this)


# ---------------------------------------------------------------------------
# Kernels
# ---------------------------------------------------------------------------
def _proj_kernel(x_ref, w0t_ref, w1t_ref, w2t_ref, b_ref, base_ref, p12_ref):
    """Per-node projections (reassociated form).

    base = x @ W0^T + bias                        (float32, N x 128)
    p12[m] = x @ W_{m+1}^T, m in {0,1}            (mat compute dtype)
    """
    x = x_ref[...]
    base = jnp.dot(x, w0t_ref[...], preferred_element_type=jnp.float32) + b_ref[...]
    base_ref[...] = base.astype(base_ref.dtype)
    p12_ref[0, :, :] = jnp.dot(
        x, w1t_ref[...], preferred_element_type=jnp.float32
    ).astype(p12_ref.dtype)
    p12_ref[1, :, :] = jnp.dot(
        x, w2t_ref[...], preferred_element_type=jnp.float32
    ).astype(p12_ref.dtype)


def _cheb_agg_kernel(mats_ref, p12_ref, base_ref, o_ref, acc_ref):
    """out = base + T1 @ p1 + T2 @ p2, tiled over (rows, term, contraction)."""
    m = pl.program_id(1)
    k = pl.program_id(2)

    @pl.when(jnp.logical_and(m == 0, k == 0))
    def _():
        acc_ref[...] = base_ref[...].astype(jnp.float32)

    acc_ref[...] += jnp.dot(
        mats_ref[...], p12_ref[...], preferred_element_type=jnp.float32
    )

    @pl.when(
        jnp.logical_and(
            m == pl.num_programs(1) - 1, k == pl.num_programs(2) - 1
        )
    )
    def _():
        o_ref[...] = acc_ref[...].astype(o_ref.dtype)


# ---------------------------------------------------------------------------
# Wrapper
# ---------------------------------------------------------------------------
def _round_up(v, m):
    return ((v + m - 1) // m) * m


def _pick_tile(n, candidates):
    for c in candidates:
        if n % c == 0:
            return c
    return n


def _pad2(a, rows, cols):
    r, c = a.shape
    return jnp.pad(a, ((0, rows - r), (0, cols - c)))


@partial(jax.jit, static_argnames=("mat_dtype",))
def simple_tchebconv_forward(x, w0, w1, w2, bias, t1, t2, mat_dtype=jnp.float32):
    """Forward pass of SimpleTchebconv.

    Args:
      x:        (N, input_dim) node features.
      w0,w1,w2: (output_dim, input_dim) Linear weights (torch layout, no bias).
      bias:     (output_dim,) shared bias.
      t1, t2:   (N, N) Chebyshev basis matrices (precomputed at init time).
      mat_dtype: dtype for the HBM-bound (N,N) matrices / projections
                 (jnp.float32 or jnp.bfloat16); accumulation is always float32.
    Returns:
      squeezed (N, output_dim) logits (same squeeze semantics as torch).
    """
    n, d = x.shape
    o = w0.shape[0]

    np_ = _round_up(n, 128)                       # node dim padded to 128
    tm = _pick_tile(np_, (256, 128))              # row tile (parallel axis)
    tk = _pick_tile(np_, (1024, 512, 256, 128))   # contraction tile

    xp = _pad2(x.astype(jnp.float32), np_, d)
    # Pad output_dim -> 128 lanes; pre-transpose once so kernels do plain y @ Wt.
    w0t = _pad2(w0.astype(jnp.float32), OP, d).T
    w1t = _pad2(w1.astype(jnp.float32), OP, d).T
    w2t = _pad2(w2.astype(jnp.float32), OP, d).T
    bp = jnp.pad(bias.astype(jnp.float32), (0, OP - o)).reshape(1, OP)

    mats = jnp.stack([_pad2(t1, np_, np_), _pad2(t2, np_, np_)]).astype(mat_dtype)

    # ---- Stage 1: per-node projections (small, row-tiled, lane-dense out) ----
    base, p12 = pl.pallas_call(
        _proj_kernel,
        out_shape=(
            jax.ShapeDtypeStruct((np_, OP), jnp.float32),
            jax.ShapeDtypeStruct((2, np_, OP), mat_dtype),
        ),
        grid_spec=pltpu.PrefetchScalarGridSpec(
            num_scalar_prefetch=0,
            grid=(np_ // tm,),
            in_specs=[
                pl.BlockSpec((tm, d), lambda i: (i, 0)),
                pl.BlockSpec((d, OP), lambda i: (0, 0)),
                pl.BlockSpec((d, OP), lambda i: (0, 0)),
                pl.BlockSpec((d, OP), lambda i: (0, 0)),
                pl.BlockSpec((1, OP), lambda i: (0, 0)),
            ],
            out_specs=[
                pl.BlockSpec((tm, OP), lambda i: (i, 0)),
                pl.BlockSpec((2, tm, OP), lambda i: (0, i, 0)),
            ],
        ),
        compiler_params=pltpu.CompilerParams(
            dimension_semantics=("parallel",),
            vmem_limit_bytes=32 * 1024 * 1024,
        ),
    )(xp, w0t, w1t, w2t, bp)

    # ---- Stage 2: out = base + T1 @ p1 + T2 @ p2 (HBM-bound on mats) ----
    item = jnp.dtype(mat_dtype).itemsize
    cost = pl.CostEstimate(
        flops=2 * (2 * np_) * np_ * OP,
        transcendentals=0,
        bytes_accessed=(
            2 * np_ * np_ * item      # mats
            + 2 * np_ * OP * item     # p12
            + 2 * np_ * OP * 4        # base + out
        ),
    )
    out_p = pl.pallas_call(
        _cheb_agg_kernel,
        out_shape=jax.ShapeDtypeStruct((np_, OP), jnp.float32),
        grid_spec=pltpu.PrefetchScalarGridSpec(
            num_scalar_prefetch=0,
            grid=(np_ // tm, 2, np_ // tk),
            in_specs=[
                pl.BlockSpec((None, tm, tk), lambda i, m, k: (m, i, k)),
                pl.BlockSpec((None, tk, OP), lambda i, m, k: (m, k, 0)),
                pl.BlockSpec((tm, OP), lambda i, m, k: (i, 0)),
            ],
            out_specs=pl.BlockSpec((tm, OP), lambda i, m, k: (i, 0)),
            scratch_shapes=[pltpu.VMEM((tm, OP), jnp.float32)],
        ),
        compiler_params=pltpu.CompilerParams(
            dimension_semantics=("parallel", "arbitrary", "arbitrary"),
            vmem_limit_bytes=32 * 1024 * 1024,
        ),
        cost_estimate=cost,
    )(mats, p12, base)

    logit = out_p[:n, :o]
    return jnp.squeeze(logit)


# ---------------------------------------------------------------------------
# Init-time helpers (plain JAX; these mirror __init__, not forward)
# ---------------------------------------------------------------------------
def build_cheb_mats(adjacency):
    """T1, T2 as in SimpleTchebconv.__init__ (add_self_loops=False)."""
    n = adjacency.shape[0]
    eye = jnp.eye(n, dtype=adjacency.dtype)
    degree = adjacency.sum(axis=1)
    d_inv_sqrt = jnp.diag(1.0 / jnp.sqrt(degree))
    adj = d_inv_sqrt @ adjacency @ d_inv_sqrt
    lap = eye - adj
    lam = lap.max()           # elementwise max, exactly as the torch code
    lap = lap / lam - eye
    t1 = lap
    t2 = 2.0 * lap @ lap - eye
    return t1, t2


def xavier_uniform(key, out_dim, in_dim, dtype=jnp.float32):
    bound = math.sqrt(6.0 / (in_dim + out_dim))
    return jax.random.uniform(
        key, (out_dim, in_dim), dtype=dtype, minval=-bound, maxval=bound
    )


if __name__ == "__main__":
    N = 64
    INPUT_DIM = 32
    OUTPUT_DIM = 1  # module default

    key = jax.random.PRNGKey(0)
    k_adj, k_x, k_w0, k_w1, k_w2 = jax.random.split(key, 5)

    # Random symmetric 0/1 adjacency (no self loops) + ring so every degree > 0.
    u = jax.random.uniform(k_adj, (N, N))
    a = (u < 0.25).astype(jnp.float32)
    a = jnp.maximum(a, a.T)
    ring = jnp.eye(N, k=1) + jnp.eye(N, k=-1)
    ring = ring.at[0, N - 1].set(1.0).at[N - 1, 0].set(1.0)
    a = jnp.clip(a + ring, 0.0, 1.0)
    a = a * (1.0 - jnp.eye(N))

    t1, t2 = build_cheb_mats(a)

    x = jax.random.normal(k_x, (N, INPUT_DIM), dtype=jnp.float32)
    w0 = xavier_uniform(k_w0, OUTPUT_DIM, INPUT_DIM)
    w1 = xavier_uniform(k_w1, OUTPUT_DIM, INPUT_DIM)
    w2 = xavier_uniform(k_w2, OUTPUT_DIM, INPUT_DIM)
    bias = jnp.zeros((OUTPUT_DIM,), dtype=jnp.float32)  # torch init: zeros

    # Reference, same association order as the PyTorch forward.
    ref = jnp.squeeze(x @ w0.T + (t1 @ x) @ w1.T + (t2 @ x) @ w2.T + bias)

    out_f32 = jax.block_until_ready(
        simple_tchebconv_forward(x, w0, w1, w2, bias, t1, t2, mat_dtype=jnp.float32)
    )
    assert out_f32.shape == ref.shape, (out_f32.shape, ref.shape)
    assert jnp.allclose(out_f32, ref, atol=2e-3, rtol=2e-3), "f32 mismatch vs ref"

    # bf16 HBM path (f32 accumulate) — looser tolerance for bf16 rounding.
    out_bf16 = jax.block_until_ready(
        simple_tchebconv_forward(x, w0, w1, w2, bias, t1, t2, mat_dtype=jnp.bfloat16)
    )
    assert jnp.allclose(out_bf16, ref, atol=5e-2, rtol=5e-2), "bf16 mismatch vs ref"

    print("KERNEL_OK")
</pallas_src>

<mosaic_0001>
module attributes {stable_mosaic.version = 11 : i64} {
  func.func @_proj_kernel(%arg0: i32, %arg1: memref<128x32xf32, #tpu.memory_space<vmem>>, %arg2: memref<32x128xf32, #tpu.memory_space<vmem>>, %arg3: memref<32x128xf32, #tpu.memory_space<vmem>>, %arg4: memref<32x128xf32, #tpu.memory_space<vmem>>, %arg5: memref<1x128xf32, #tpu.memory_space<vmem>>, %arg6: memref<128x128xf32, #tpu.memory_space<vmem>>, %arg7: memref<2x128x128xf32, #tpu.memory_space<vmem>>) attributes {dimension_semantics = [#tpu.dimension_semantics<parallel>], iteration_bounds = array<i64: 1>, scalar_prefetch = 0 : i64, scratch_operands = 0 : i64, tpu.core_type = #tpu.core_type<tc>, window_params = [{transform_indices = @transform_0, window_bounds = array<i64: 128, 32>}, {pipeline_mode = #tpu.pipeline_mode<synchronous>, transform_indices = @transform_1, window_bounds = array<i64: 32, 128>}, {pipeline_mode = #tpu.pipeline_mode<synchronous>, transform_indices = @transform_2, window_bounds = array<i64: 32, 128>}, {pipeline_mode = #tpu.pipeline_mode<synchronous>, transform_indices = @transform_3, window_bounds = array<i64: 32, 128>}, {pipeline_mode = #tpu.pipeline_mode<synchronous>, transform_indices = @transform_4, window_bounds = array<i64: 1, 128>}, {transform_indices = @transform_5, window_bounds = array<i64: 128, 128>}, {transform_indices = @transform_6, window_bounds = array<i64: 2, 128, 128>}]} {
    %c0 = arith.constant 0 : index
    %c0_0 = arith.constant 0 : index
    %0 = vector.load %arg1[%c0, %c0_0] : memref<128x32xf32, #tpu.memory_space<vmem>>, vector<128x32xf32>
    %c0_1 = arith.constant 0 : index
    %c0_2 = arith.constant 0 : index
    %1 = vector.load %arg2[%c0_1, %c0_2] : memref<32x128xf32, #tpu.memory_space<vmem>>, vector<32x128xf32>
    %cst = arith.constant dense<0.000000e+00> : vector<128x128xf32>
    %2 = tpu.matmul %0, %1, %cst {dimension_numbers = #tpu.dot_dimension_numbers<[1], [0], [0], [1], [0, 0, 1, 1], [], []>} : vector<128x32xf32>, vector<32x128xf32>, vector<128x128xf32> -> vector<128x128xf32>
    %c0_3 = arith.constant 0 : index
    %c0_4 = arith.constant 0 : index
    %3 = vector.load %arg5[%c0_3, %c0_4] : memref<1x128xf32, #tpu.memory_space<vmem>>, vector<1x128xf32>
    %4 = vector.broadcast %3 : vector<1x128xf32> to vector<128x128xf32>
    %5 = arith.addf %2, %4 : vector<128x128xf32>
    %c0_5 = arith.constant 0 : index
    %c0_6 = arith.constant 0 : index
    %6 = vector.load %arg6[%c0_5, %c0_6] : memref<128x128xf32, #tpu.memory_space<vmem>>, vector<128x128xf32>
    tpu.vector_store %arg6[%c0_5, %c0_6], %5 {strides = array<i32>} : memref<128x128xf32, #tpu.memory_space<vmem>>, vector<128x128xf32>,
    %c0_7 = arith.constant 0 : index
    %c0_8 = arith.constant 0 : index
    %7 = vector.load %arg3[%c0_7, %c0_8] : memref<32x128xf32, #tpu.memory_space<vmem>>, vector<32x128xf32>
    %cst_9 = arith.constant dense<0.000000e+00> : vector<128x128xf32>
    %8 = tpu.matmul %0, %7, %cst_9 {dimension_numbers = #tpu.dot_dimension_numbers<[1], [0], [0], [1], [0, 0, 1, 1], [], []>} : vector<128x32xf32>, vector<32x128xf32>, vector<128x128xf32> -> vector<128x128xf32>
    %c0_10 = arith.constant 0 : index
    %c0_11 = arith.constant 0 : index
    %c0_12 = arith.constant 0 : index
    %9 = vector.load %arg7[%c0_10, %c0_11, %c0_12] : memref<2x128x128xf32, #tpu.memory_space<vmem>>, vector<1x128x128xf32>
    %10 = vector.shape_cast %9 : vector<1x128x128xf32> to vector<128x128xf32>
    %11 = vector.shape_cast %8 : vector<128x128xf32> to vector<1x128x128xf32>
    tpu.vector_store %arg7[%c0_10, %c0_11, %c0_12], %11 {strides = array<i32>} : memref<2x128x128xf32, #tpu.memory_space<vmem>>, vector<1x128x128xf32>,
    %c0_13 = arith.constant 0 : index
    %c0_14 = arith.constant 0 : index
    %12 = vector.load %arg4[%c0_13, %c0_14] : memref<32x128xf32, #tpu.memory_space<vmem>>, vector<32x128xf32>
    %cst_15 = arith.constant dense<0.000000e+00> : vector<128x128xf32>
    %13 = tpu.matmul %0, %12, %cst_15 {dimension_numbers = #tpu.dot_dimension_numbers<[1], [0], [0], [1], [0, 0, 1, 1], [], []>} : vector<128x32xf32>, vector<32x128xf32>, vector<128x128xf32> -> vector<128x128xf32>
    %c1 = arith.constant 1 : index
    %c0_16 = arith.constant 0 : index
    %c0_17 = arith.constant 0 : index
    %14 = vector.load %arg7[%c1, %c0_16, %c0_17] : memref<2x128x128xf32, #tpu.memory_space<vmem>>, vector<1x128x128xf32>
    %15 = vector.shape_cast %14 : vector<1x128x128xf32> to vector<128x128xf32>
    %16 = vector.shape_cast %13 : vector<128x128xf32> to vector<1x128x128xf32>
    tpu.vector_store %arg7[%c1, %c0_16, %c0_17], %16 {strides = array<i32>} : memref<2x128x128xf32, #tpu.memory_space<vmem>>, vector<1x128x128xf32>,
    return
  }
  func.func @transform_0(%arg0: i32) -> (i32, i32) {
    %c0_i32 = arith.constant 0 : i32
    %c0_i32_0 = arith.constant 0 : i32
    return %arg0, %c0_i32 : i32, i32
  }
  func.func @transform_1(%arg0: i32) -> (i32, i32) {
    %c0_i32 = arith.constant 0 : i32
    %c0_i32_0 = arith.constant 0 : i32
    %c0_i32_1 = arith.constant 0 : i32
    return %c0_i32, %c0_i32_0 : i32, i32
  }
  func.func @transform_2(%arg0: i32) -> (i32, i32) {
    %c0_i32 = arith.constant 0 : i32
    %c0_i32_0 = arith.constant 0 : i32
    %c0_i32_1 = arith.constant 0 : i32
    return %c0_i32, %c0_i32_0 : i32, i32
  }
  func.func @transform_3(%arg0: i32) -> (i32, i32) {
    %c0_i32 = arith.constant 0 : i32
    %c0_i32_0 = arith.constant 0 : i32
    %c0_i32_1 = arith.constant 0 : i32
    return %c0_i32, %c0_i32_0 : i32, i32
  }
  func.func @transform_4(%arg0: i32) -> (i32, i32) {
    %c0_i32 = arith.constant 0 : i32
    %c0_i32_0 = arith.constant 0 : i32
    %c0_i32_1 = arith.constant 0 : i32
    return %c0_i32, %c0_i32_0 : i32, i32
  }
  func.func @transform_5(%arg0: i32) -> (i32, i32) {
    %c0_i32 = arith.constant 0 : i32
    %c0_i32_0 = arith.constant 0 : i32
    return %arg0, %c0_i32 : i32, i32
  }
  func.func @transform_6(%arg0: i32) -> (i32, i32, i32) {
    %c0_i32 = arith.constant 0 : i32
    %c0_i32_0 = arith.constant 0 : i32
    %c0_i32_1 = arith.constant 0 : i32
    return %c0_i32, %arg0, %c0_i32_0 : i32, i32, i32
  }
}

module attributes {stable_mosaic.version = 11 : i64} {
  func.func @_cheb_agg_kernel(%arg0: i32, %arg1: i32, %arg2: i32, %arg3: memref<1x128x128xf32, #tpu.memory_space<vmem>>, %arg4: memref<1x128x128xf32, #tpu.memory_space<vmem>>, %arg5: memref<128x128xf32, #tpu.memory_space<vmem>>, %arg6: memref<128x128xf32, #tpu.memory_space<vmem>>, %arg7: memref<128x128xf32, #tpu.memory_space<vmem>>) attributes {dimension_semantics = [#tpu.dimension_semantics<parallel>, #tpu.dimension_semantics<arbitrary>, #tpu.dimension_semantics<arbitrary>], iteration_bounds = array<i64: 1, 2, 1>, scalar_prefetch = 0 : i64, scratch_operands = 1 : i64, tpu.core_type = #tpu.core_type<tc>, window_params = [{transform_indices = @transform_0, window_bounds = array<i64: 1, 128, 128>}, {transform_indices = @transform_1, window_bounds = array<i64: 1, 128, 128>}, {transform_indices = @transform_2, window_bounds = array<i64: 128, 128>}, {transform_indices = @transform_3, window_bounds = array<i64: 128, 128>}]} {
    %c0_i32 = arith.constant 0 : i32
    %0 = arith.cmpi eq, %arg1, %c0_i32 : i32
    %c0_i32_0 = arith.constant 0 : i32
    %1 = arith.cmpi eq, %arg2, %c0_i32_0 : i32
    %2 = arith.andi %0, %1 : i1
    %3 = arith.extui %2 : i1 to i32
    %c0_i32_1 = arith.constant 0 : i32
    %4 = arith.cmpi ne, %3, %c0_i32_1 : i32
    scf.if %4 {
      %c0_13 = arith.constant 0 : index
      %c0_14 = arith.constant 0 : index
      %18 = vector.load %arg5[%c0_13, %c0_14] : memref<128x128xf32, #tpu.memory_space<vmem>>, vector<128x128xf32>
      %c0_15 = arith.constant 0 : index
      %c0_16 = arith.constant 0 : index
      %19 = vector.load %arg7[%c0_15, %c0_16] : memref<128x128xf32, #tpu.memory_space<vmem>>, vector<128x128xf32>
      tpu.vector_store %arg7[%c0_15, %c0_16], %18 {strides = array<i32>} : memref<128x128xf32, #tpu.memory_space<vmem>>, vector<128x128xf32>,
    } else {
    }
    %c0 = arith.constant 0 : index
    %c0_2 = arith.constant 0 : index
    %5 = vector.load %arg7[%c0, %c0_2] : memref<128x128xf32, #tpu.memory_space<vmem>>, vector<128x128xf32>
    %c0_3 = arith.constant 0 : index
    %c0_4 = arith.constant 0 : index
    %c0_5 = arith.constant 0 : index
    %6 = vector.load %arg3[%c0_3, %c0_4, %c0_5] : memref<1x128x128xf32, #tpu.memory_space<vmem>>, vector<1x128x128xf32>
    %7 = vector.shape_cast %6 : vector<1x128x128xf32> to vector<128x128xf32>
    %c0_6 = arith.constant 0 : index
    %c0_7 = arith.constant 0 : index
    %c0_8 = arith.constant 0 : index
    %8 = vector.load %arg4[%c0_6, %c0_7, %c0_8] : memref<1x128x128xf32, #tpu.memory_space<vmem>>, vector<1x128x128xf32>
    %9 = vector.shape_cast %8 : vector<1x128x128xf32> to vector<128x128xf32>
    %cst = arith.constant dense<0.000000e+00> : vector<128x128xf32>
    %10 = tpu.matmul %7, %9, %cst {dimension_numbers = #tpu.dot_dimension_numbers<[1], [0], [0], [1], [0, 0, 1, 1], [], []>} : vector<128x128xf32>, vector<128x128xf32>, vector<128x128xf32> -> vector<128x128xf32>
    %11 = arith.addf %5, %10 : vector<128x128xf32>
    %c0_9 = arith.constant 0 : index
    %c0_10 = arith.constant 0 : index
    %12 = vector.load %arg7[%c0_9, %c0_10] : memref<128x128xf32, #tpu.memory_space<vmem>>, vector<128x128xf32>
    tpu.vector_store %arg7[%c0_9, %c0_10], %11 {strides = array<i32>} : memref<128x128xf32, #tpu.memory_space<vmem>>, vector<128x128xf32>,
    %c1_i32 = arith.constant 1 : i32
    %13 = arith.cmpi eq, %arg1, %c1_i32 : i32
    %c0_i32_11 = arith.constant 0 : i32
    %14 = arith.cmpi eq, %arg2, %c0_i32_11 : i32
    %15 = arith.andi %13, %14 : i1
    %16 = arith.extui %15 : i1 to i32
    %c0_i32_12 = arith.constant 0 : i32
    %17 = arith.cmpi ne, %16, %c0_i32_12 : i32
    scf.if %17 {
      %c0_13 = arith.constant 0 : index
      %c0_14 = arith.constant 0 : index
      %18 = vector.load %arg7[%c0_13, %c0_14] : memref<128x128xf32, #tpu.memory_space<vmem>>, vector<128x128xf32>
      %c0_15 = arith.constant 0 : index
      %c0_16 = arith.constant 0 : index
      %19 = vector.load %arg6[%c0_15, %c0_16] : memref<128x128xf32, #tpu.memory_space<vmem>>, vector<128x128xf32>
      tpu.vector_store %arg6[%c0_15, %c0_16], %18 {strides = array<i32>} : memref<128x128xf32, #tpu.memory_space<vmem>>, vector<128x128xf32>,
    } else {
    }
    return
  }
  func.func @transform_0(%arg0: i32, %arg1: i32, %arg2: i32) -> (i32, i32, i32) {
    %c0_i32 = arith.constant 0 : i32
    return %arg1, %arg0, %arg2 : i32, i32, i32
  }
  func.func @transform_1(%arg0: i32, %arg1: i32, %arg2: i32) -> (i32, i32, i32) {
    %c0_i32 = arith.constant 0 : i32
    %c0_i32_0 = arith.constant 0 : i32
    return %arg1, %arg2, %c0_i32 : i32, i32, i32
  }
  func.func @transform_2(%arg0: i32, %arg1: i32, %arg2: i32) -> (i32, i32) {
    %c0_i32 = arith.constant 0 : i32
    %c0_i32_0 = arith.constant 0 : i32
    return %arg0, %c0_i32 : i32, i32
  }
  func.func @transform_3(%arg0: i32, %arg1: i32, %arg2: i32) -> (i32, i32) {
    %c0_i32 = arith.constant 0 : i32
    %c0_i32_0 = arith.constant 0 : i32
    return %arg0, %c0_i32 : i32, i32
  }
}

</mosaic_0001>

<bundles_post_ra>
// kernel: simple_tchebconv_forward.3
= control target key start
LH: loop header
LB: loop body
LE: loop exit
PB: predicated region body
PF: predicated region fallthrough
CT: control target
= control target key end

     0   :  { %s738_s12 = smov 0   ;;  %s740_s13 = smov 0   ;;  %s911_s0 = inlined_call_operand.vmem [shape: f32[2,128,128], index: 0, kind: input, shape index: {}]   ;;  %s912_s1 = inlined_call_operand.vmem [shape: f32[2,128,128], index: 1, kind: input, shape index: {}]   ;;  %s913_s2 = inlined_call_operand.vmem [shape: f32[128,128], index: 2, kind: input, shape index: {}]   ;;  %s914_s3 = inlined_call_operand.vmem [shape: f32[128,128], index: 3, kind: output, shape index: {}]  }
   0x1   :  { %s742_s14 = smov 0  }
   0x2 LB: > { %s28_s15 = sadd.s32 1, %s712_s13  ;;  %p607_p0 = scmp.ge.s32.totalorder %s716_s14, 1  ;;  %s716_s14 = sphi %s742_s14, %s13_s14   ;;  %s712_s13 = sphi %s740_s13, %s916_s13   ;;  %s708_s12 = sphi %s738_s12, %s915_s12  }
   0x3   : > { %p30_p1 = scmp.ge.s32.totalorder %s28_s15, 2  ;;  %p196_p2 = scmp.lt.s32.totalorder %s716_s14, 3 }
   0x5   : > { %s918_s15 = smov (%p30_p1, %s28_s15), 0  ;;  %p197_p3 = pnand %p607_p0, %p196_p2 }
   0x6   : > { %p242_p4 = scmp.lt.s32.totalorder (!%p197_p3), %s708_s12, 1  ;;  %p276_p5 = scmp.eq.s32.totalorder (!%p197_p3), %s708_s12, 0 }
   0x7   : > { %200 = sbr.rel (%p197_p3) target bundleno = 229 (0xe5), region = 32 }
   0xc   : > { %s243_s16 = scalar_select %p242_p4, %s708_s12, 1  ;;  %v282_v0 = vld [vmem:[%s913_s2] sm:$0xff] (%p276_p5)  ;;  %v283_v1 = vld [vmem:[%s913_s2 + $0x8] sm:$0xff] (%p276_p5)  ;;  %v284_v2 = vld [vmem:[%s913_s2 + $0x10] sm:$0xff] (%p276_p5) }
   0xd   : > { %281 = sbr.rel (!%p276_p5) target bundleno = 29 (0x1d), region = 36  ;;  %298 = vst [vmem:[#allocation2 + $0x30] sm:$0xff] (%p276_p5), %v282_v0  ;;  %v285_v3 = vld [vmem:[%s913_s2 + $0x18] sm:$0xff] (%p276_p5)  ;;  %v286_v4 = vld [vmem:[%s913_s2 + $0x20] sm:$0xff] (%p276_p5)  ;;  %v287_v5 = vld [vmem:[%s913_s2 + $0x28] sm:$0xff] (%p276_p5) }
   0xe   : > { %s618_s17 = sshll.u32 %s243_s16, 7  ;;  %299 = vst [vmem:[#allocation2] sm:$0xff] (%p276_p5), %v283_v1  ;;  %v288_v6 = vld [vmem:[%s913_s2 + $0x30] sm:$0xff] (%p276_p5)  ;;  %v289_v7 = vld [vmem:[%s913_s2 + $0x38] sm:$0xff] (%p276_p5)  ;;  %v290_v8 = vld [vmem:[%s913_s2 + $0x40] sm:$0xff] (%p276_p5) }
   0xf   : > { %s764_s20 = scalar_lea.vmem %s911_s0, %s618_s17  ;;  %s769_s23 = scalar_lea.vmem %s912_s1, %s618_s17  ;;  %300 = vst [vmem:[#allocation2 + $0x58] sm:$0xff] (%p276_p5), %v284_v2  ;;  %v291_v9 = vld [vmem:[%s913_s2 + $0x48] sm:$0xff] (%p276_p5)  ;;  %v292_v10 = vld [vmem:[%s913_s2 + $0x50] sm:$0xff] (%p276_p5)  ;;  %v293_v11 = vld [vmem:[%s913_s2 + $0x58] sm:$0xff] (%p276_p5) }
  0x10   : > { %301 = vst [vmem:[#allocation2 + $0x18] sm:$0xff] (%p276_p5), %v285_v3  ;;  %v294_v12 = vld [vmem:[%s913_s2 + $0x60] sm:$0xff] (%p276_p5)  ;;  %v295_v13 = vld [vmem:[%s913_s2 + $0x68] sm:$0xff] (%p276_p5)  ;;  %v296_v14 = vld [vmem:[%s913_s2 + $0x70] sm:$0xff] (%p276_p5) }
  0x11   : > { %302 = vst [vmem:[#allocation2 + $0x50] sm:$0xff] (%p276_p5), %v286_v4  ;;  %v297_v15 = vld [vmem:[%s913_s2 + $0x78] sm:$0xff] (%p276_p5) }
  0x12   : > { %303 = vst [vmem:[#allocation2 + $0x68] sm:$0xff] %v287_v5 }
  0x13   : > { %304 = vst [vmem:[#allocation2 + $0x8] sm:$0xff] %v288_v6 }
  0x14   : > { %305 = vst [vmem:[#allocation2 + $0x48] sm:$0xff] %v289_v7 }
  0x15   : > { %306 = vst [vmem:[#allocation2 + $0x40] sm:$0xff] %v290_v8 }
  0x16   : > { %307 = vst [vmem:[#allocation2 + $0x20] sm:$0xff] %v291_v9 }
  0x17   : > { %308 = vst [vmem:[#allocation2 + $0x10] sm:$0xff] %v292_v10 }
  0x18   : > { %309 = vst [vmem:[#allocation2 + $0x38] sm:$0xff] %v293_v11 }
  0x19   : > { %310 = vst [vmem:[#allocation2 + $0x60] sm:$0xff] %v294_v12 }
  0x1a   : > { %311 = vst [vmem:[#allocation2 + $0x70] sm:$0xff] %v295_v13 }
  0x1b   : > { %312 = vst [vmem:[#allocation2 + $0x78] sm:$0xff] %v296_v14 }
  0x1c   : > { %313 = vst [vmem:[#allocation2 + $0x28] sm:$0xff] %v297_v15 }
  0x1d PF: > { %v361_v16 = vld [vmem:[%s769_s23 + $0x78] sm:$0xff]  ;;  %v360_v17 = vld [vmem:[%s769_s23 + $0x70] sm:$0xff]  ;;  %v359_v18 = vld [vmem:[%s769_s23 + $0x68] sm:$0xff]  ;;  %p459_p6 = scmp.eq.s32.totalorder %s708_s12, 1 }
  0x1e   : > { %623 = vmatpush.msra.mxu2 %v361_v16  ;;  %624 = vmatpush.msra.mxu3 %v361_v16  ;;  %v358_v19 = vld [vmem:[%s769_s23 + $0x60] sm:$0xff]  ;;  %v357_v20 = vld [vmem:[%s769_s23 + $0x58] sm:$0xff]  ;;  %v356_v21 = vld [vmem:[%s769_s23 + $0x50] sm:$0xff] }
  0x1f   : > { %362 = vmatpush.msra.mxu0 %v361_v16  ;;  %622 = vmatpush.msra.mxu1 %v361_v16  ;;  %v355_v22 = vld [vmem:[%s769_s23 + $0x48] sm:$0xff]  ;;  %v354_v23 = vld [vmem:[%s769_s23 + $0x40] sm:$0xff]  ;;  %v353_v24 = vld [vmem:[%s769_s23 + $0x38] sm:$0xff] }
  0x20   : > { %626 = vmatpush.msra.mxu2 %v360_v17  ;;  %627 = vmatpush.msra.mxu3 %v360_v17  ;;  %v352_v25 = vld [vmem:[%s769_s23 + $0x30] sm:$0xff]  ;;  %v351_v26 = vld [vmem:[%s769_s23 + $0x28] sm:$0xff]  ;;  %v350_v27 = vld [vmem:[%s769_s23 + $0x20] sm:$0xff] }
  0x21   : > { %363 = vmatpush.msra.mxu0 %v360_v17  ;;  %625 = vmatpush.msra.mxu1 %v360_v17  ;;  %v349_v28 = vld [vmem:[%s769_s23 + $0x18] sm:$0xff]  ;;  %v348_v29 = vld [vmem:[%s769_s23 + $0x10] sm:$0xff]  ;;  %v347_v30 = vld [vmem:[%s769_s23 + $0x8] sm:$0xff] }
  0x22   : > { %629 = vmatpush.msra.mxu2 %v359_v18  ;;  %630 = vmatpush.msra.mxu3 %v359_v18  ;;  %v346_v31 = vld [vmem:[%s769_s23] sm:$0xff]  ;;  %v339_v36 = vld [vmem:[%s764_s20 + $0x48] sm:$0xff]  ;;  %v340_v40 = vld [vmem:[%s764_s20 + $0x50] sm:$0xff] }
  0x23   : > { %364 = vmatpush.msra.mxu0 %v359_v18  ;;  %628 = vmatpush.msra.mxu1 %v359_v18  ;;  %v338_v32 = vld [vmem:[%s764_s20 + $0x40] sm:$0xff]  ;;  %v343_v37 = vld [vmem:[%s764_s20 + $0x68] sm:$0xff]  ;;  %v344_v41 = vld [vmem:[%s764_s20 + $0x70] sm:$0xff] }
  0x24   : > { %632 = vmatpush.msra.mxu2 %v358_v19  ;;  %633 = vmatpush.msra.mxu3 %v358_v19  ;;  %v342_v33 = vld [vmem:[%s764_s20 + $0x60] sm:$0xff]  ;;  %v331_v38 = vld [vmem:[%s764_s20 + $0x8] sm:$0xff]  ;;  %v332_v42 = vld [vmem:[%s764_s20 + $0x10] sm:$0xff] }
  0x25   : > { %365 = vmatpush.msra.mxu0 %v358_v19  ;;  %631 = vmatpush.msra.mxu1 %v358_v19  ;;  %v330_v34 = vld [vmem:[%s764_s20] sm:$0xff]  ;;  %v335_v39 = vld [vmem:[%s764_s20 + $0x28] sm:$0xff]  ;;  %v336_v43 = vld [vmem:[%s764_s20 + $0x30] sm:$0xff] }
  0x26   : > { %635 = vmatpush.msra.mxu2 %v357_v20  ;;  %636 = vmatpush.msra.mxu3 %v357_v20  ;;  %v334_v35 = vld [vmem:[%s764_s20 + $0x20] sm:$0xff]  ;;  %v341_v44 = vld [vmem:[%s764_s20 + $0x58] sm:$0xff]  ;;  %v314_v48 = vld [vmem:[#allocation2 + $0x30] sm:$0xff] }
  0x27   : > { %366 = vmatpush.msra.mxu0 %v357_v20  ;;  %634 = vmatpush.msra.mxu1 %v357_v20  ;;  %v345_v45 = vld [vmem:[%s764_s20 + $0x78] sm:$0xff]  ;;  %v318_v49 = vld [vmem:[#allocation2 + $0x50] sm:$0xff]  ;;  %v322_v54 = vld [vmem:[#allocation2 + $0x40] sm:$0xff] }
  0x28   : > { %638 = vmatpush.msra.mxu2 %v356_v21  ;;  %639 = vmatpush.msra.mxu3 %v356_v21  ;;  %v333_v46 = vld [vmem:[%s764_s20 + $0x18] sm:$0xff]  ;;  %v326_v55 = vld [vmem:[#allocation2 + $0x60] sm:$0xff]  ;;  %v319_v61 = vld [vmem:[#allocation2 + $0x68] sm:$0xff] }
  0x29   : > { %367 = vmatpush.msra.mxu0 %v356_v21  ;;  %637 = vmatpush.msra.mxu1 %v356_v21  ;;  %v337_v47 = vld [vmem:[%s764_s20 + $0x38] sm:$0xff]  ;;  %v315_v60 = vld [vmem:[#allocation2] sm:$0xff]  ;;  %v327_v3 = vld [vmem:[#allocation2 + $0x70] sm:$0xff] }
  0x2a   : > { %641 = vmatpush.msra.mxu2 %v355_v22  ;;  %642 = vmatpush.msra.mxu3 %v355_v22  ;;  %v323_v2 = vld [vmem:[#allocation2 + $0x20] sm:$0xff]  ;;  %v316_v8 = vld [vmem:[#allocation2 + $0x58] sm:$0xff]  ;;  %v320_v9 = vld [vmem:[#allocation2 + $0x8] sm:$0xff] }
  0x2b   : > { %368 = vmatpush.msra.mxu0 %v355_v22  ;;  %640 = vmatpush.msra.mxu1 %v355_v22  ;;  %v324_v14 = vld [vmem:[#allocation2 + $0x10] sm:$0xff]  ;;  %v328_v15 = vld [vmem:[#allocation2 + $0x78] sm:$0xff]  ;;  %v321_v21 = vld [vmem:[#allocation2 + $0x48] sm:$0xff] }
  0x2c   : > { %644 = vmatpush.msra.mxu2 %v354_v23  ;;  %645 = vmatpush.msra.mxu3 %v354_v23  ;;  %v317_v20 = vld [vmem:[#allocation2 + $0x18] sm:$0xff] }
  0x2d   : > { %369 = vmatpush.msra.mxu0 %v354_v23  ;;  %643 = vmatpush.msra.mxu1 %v354_v23 }
  0x2e   : > { %647 = vmatpush.msra.mxu2 %v353_v24  ;;  %648 = vmatpush.msra.mxu3 %v353_v24 }
  0x2f   : > { %370 = vmatpush.msra.mxu0 %v353_v24  ;;  %646 = vmatpush.msra.mxu1 %v353_v24 }
  0x30   : > { %650 = vmatpush.msra.mxu2 %v352_v25  ;;  %651 = vmatpush.msra.mxu3 %v352_v25 }
  0x31   : > { %371 = vmatpush.msra.mxu0 %v352_v25  ;;  %649 = vmatpush.msra.mxu1 %v352_v25 }
  0x32   : > { %653 = vmatpush.msra.mxu2 %v351_v26  ;;  %654 = vmatpush.msra.mxu3 %v351_v26 }
  0x33   : > { %372 = vmatpush.msra.mxu0 %v351_v26  ;;  %652 = vmatpush.msra.mxu1 %v351_v26  ;;  %v325_v26 = vld [vmem:[#allocation2 + $0x38] sm:$0xff] }
  0x34   : > { %656 = vmatpush.msra.mxu2 %v350_v27  ;;  %657 = vmatpush.msra.mxu3 %v350_v27 }
  0x35   : > { %373 = vmatpush.msra.mxu0 %v350_v27  ;;  %655 = vmatpush.msra.mxu1 %v350_v27  ;;  %v329_v27 = vld [vmem:[#allocation2 + $0x28] sm:$0xff] }
  0x36   : > { %659 = vmatpush.msra.mxu2 %v349_v28  ;;  %660 = vmatpush.msra.mxu3 %v349_v28 }
  0x37   : > { %374 = vmatpush.msra.mxu0 %v349_v28  ;;  %658 = vmatpush.msra.mxu1 %v349_v28 }
  0x38   : > { %662 = vmatpush.msra.mxu2 %v348_v29  ;;  %663 = vmatpush.msra.mxu3 %v348_v29 }
  0x39   : > { %375 = vmatpush.msra.mxu0 %v348_v29  ;;  %661 = vmatpush.msra.mxu1 %v348_v29 }
  0x3a   : > { %665 = vmatpush.msra.mxu2 %v347_v30  ;;  %666 = vmatpush.msra.mxu3 %v347_v30 }
  0x3b   : > { %376 = vmatpush.msra.mxu0 %v347_v30  ;;  %664 = vmatpush.msra.mxu1 %v347_v30 }
  0x3c   : > { %668 = vmatpush.msra.mxu2 %v346_v31  ;;  %669 = vmatpush.msra.mxu3 %v346_v31 }
  0x3d   : > { %402 = vmatmul.f32.vlgmr.msra.gmra.mxu2 %v338_v32  ;;  %414 = vmatmul.f32.vlgmr.msra.gmra.mxu3 %v342_v33 }
  0x3e   : > { %377 = vmatpush.msra.mxu0 %v346_v31  ;;  %667 = vmatpush.msra.mxu1 %v346_v31 }
  0x3f   : > { %378 = vmatmul.f32.vlgmr.msra.gmra.mxu0 %v330_v34  ;;  %390 = vmatmul.f32.vlgmr.msra.gmra.mxu1 %v334_v35 }
  0x45   : > { %405 = vmatmul.f32.gmra.mxu2 %v339_v36  ;;  %417 = vmatmul.f32.gmra.mxu3 %v343_v37 }
  0x47   : > { %381 = vmatmul.f32.gmra.mxu0 %v331_v38  ;;  %393 = vmatmul.f32.gmra.mxu1 %v335_v39 }
  0x4d   : > { %408 = vmatmul.f32.gmra.mxu2 %v340_v40  ;;  %420 = vmatmul.f32.gmra.mxu3 %v344_v41 }
  0x4f   : > { %384 = vmatmul.f32.gmra.mxu0 %v332_v42  ;;  %396 = vmatmul.f32.gmra.mxu1 %v336_v43 }
  0x55   : > { %411 = vmatmul.f32.gmra.mxu2 %v341_v44  ;;  %423 = vmatmul.f32.gmra.mxu3 %v345_v45 }
  0x57   : > { %387 = vmatmul.f32.gmra.mxu0 %v333_v46  ;;  %399 = vmatmul.f32.gmra.mxu1 %v337_v47 }
  0xbc   : > { %v379_v50 = vpop.f32.mrf.mxu0  ;;  %v391_v51 = vpop.f32.mrf.mxu1 }
  0xbd   : > { %v427_v52 = vadd.f32 %v379_v50, %v314_v48  ;;  %v431_v53 = vadd.f32 %v391_v51, %v318_v49 }
  0xbf   : > { %443 = vst [vmem:[#allocation2 + $0x30] sm:$0xff] %v427_v52 }
  0xc0   : > { %447 = vst [vmem:[#allocation2 + $0x50] sm:$0xff] %v431_v53  ;;  %v403_v56 = vpop.f32.mrf.mxu2  ;;  %v415_v57 = vpop.f32.mrf.mxu3 }
  0xc1   : > { %v435_v58 = vadd.f32 %v403_v56, %v322_v54  ;;  %v439_v59 = vadd.f32 %v415_v57, %v326_v55 }
  0xc3   : > { %451 = vst [vmem:[#allocation2 + $0x40] sm:$0xff] %v435_v58 }
  0xc4   : > { %455 = vst [vmem:[#allocation2 + $0x60] sm:$0xff] %v439_v59  ;;  %v382_v62 = vpop.f32.mrf.mxu0  ;;  %v394_v63 = vpop.f32.mrf.mxu1 }
  0xc5   : > { %v428_v0 = vadd.f32 %v382_v62, %v315_v60  ;;  %v432_v1 = vadd.f32 %v394_v63, %v319_v61 }
  0xc6   : > { %v464_v32 = vld [vmem:[#allocation2 + $0x30] sm:$0xff] (%p459_p6) }
  0xc7   : > { %444 = vst [vmem:[#allocation2] sm:$0xff] %v428_v0  ;;  %v468_v36 = vld [vmem:[#allocation2 + $0x50] sm:$0xff] (%p459_p6) }
  0xc8   : > { %448 = vst [vmem:[#allocation2 + $0x68] sm:$0xff] %v432_v1  ;;  %v406_v4 = vpop.f32.mrf.mxu2  ;;  %v418_v5 = vpop.f32.mrf.mxu3 }
  0xc9   : > { %v436_v6 = vadd.f32 %v406_v4, %v323_v2  ;;  %v440_v7 = vadd.f32 %v418_v5, %v327_v3  ;;  %480 = vst [vmem:[%s914_s3] sm:$0xff] (%p459_p6), %v464_v32 }
  0xca   : > { %484 = vst [vmem:[%s914_s3 + $0x20] sm:$0xff] (%p459_p6), %v468_v36  ;;  %v472_v40 = vld [vmem:[#allocation2 + $0x40] sm:$0xff] (%p459_p6) }
  0xcb   : > { %452 = vst [vmem:[#allocation2 + $0x20] sm:$0xff] %v436_v6  ;;  %v476_v44 = vld [vmem:[#allocation2 + $0x60] sm:$0xff] (%p459_p6) }
  0xcc   : > { %456 = vst [vmem:[#allocation2 + $0x70] sm:$0xff] %v440_v7  ;;  %v385_v10 = vpop.f32.mrf.mxu0  ;;  %v397_v11 = vpop.f32.mrf.mxu1 }
  0xcd   : > { %v429_v12 = vadd.f32 %v385_v10, %v316_v8  ;;  %v433_v13 = vadd.f32 %v397_v11, %v320_v9  ;;  %488 = vst [vmem:[%s914_s3 + $0x40] sm:$0xff] (%p459_p6), %v472_v40 }
  0xce   : > { %v465_v33 = vld [vmem:[#allocation2] sm:$0xff] (%p459_p6)  ;;  %492 = vst [vmem:[%s914_s3 + $0x60] sm:$0xff] (%p459_p6), %v476_v44 }
  0xcf   : > { %445 = vst [vmem:[#allocation2 + $0x58] sm:$0xff] %v429_v12  ;;  %v469_v37 = vld [vmem:[#allocation2 + $0x68] sm:$0xff] (%p459_p6) }
  0xd0   : > { %449 = vst [vmem:[#allocation2 + $0x8] sm:$0xff] %v433_v13  ;;  %v409_v16 = vpop.f32.mrf.mxu2  ;;  %v421_v17 = vpop.f32.mrf.mxu3 }
  0xd1   : > { %v437_v18 = vadd.f32 %v409_v16, %v324_v14  ;;  %v441_v19 = vadd.f32 %v421_v17, %v328_v15  ;;  %481 = vst [vmem:[%s914_s3 + $0x8] sm:$0xff] (%p459_p6), %v465_v33 }
  0xd2   : > { %485 = vst [vmem:[%s914_s3 + $0x28] sm:$0xff] (%p459_p6), %v469_v37  ;;  %v473_v41 = vld [vmem:[#allocation2 + $0x20] sm:$0xff] (%p459_p6) }
  0xd3   : > { %453 = vst [vmem:[#allocation2 + $0x10] sm:$0xff] %v437_v18  ;;  %v477_v45 = vld [vmem:[#allocation2 + $0x70] sm:$0xff] (%p459_p6) }
  0xd4   : > { %457 = vst [vmem:[#allocation2 + $0x78] sm:$0xff] %v441_v19  ;;  %v388_v22 = vpop.f32.mrf.mxu0  ;;  %v400_v23 = vpop.f32.mrf.mxu1 }
  0xd5   : > { %v430_v24 = vadd.f32 %v388_v22, %v317_v20  ;;  %v434_v25 = vadd.f32 %v400_v23, %v321_v21  ;;  %489 = vst [vmem:[%s914_s3 + $0x48] sm:$0xff] (%p459_p6), %v473_v41 }
  0xd6   : > { %v466_v34 = vld [vmem:[#allocation2 + $0x58] sm:$0xff] (%p459_p6)  ;;  %493 = vst [vmem:[%s914_s3 + $0x68] sm:$0xff] (%p459_p6), %v477_v45 }
  0xd7   : > { %446 = vst [vmem:[#allocation2 + $0x18] sm:$0xff] %v430_v24  ;;  %v470_v38 = vld [vmem:[#allocation2 + $0x8] sm:$0xff] (%p459_p6) }
  0xd8   : > { %450 = vst [vmem:[#allocation2 + $0x48] sm:$0xff] %v434_v25  ;;  %v412_v28 = vpop.f32.mrf.mxu2  ;;  %v424_v29 = vpop.f32.mrf.mxu3  ;;  %463 = sbr.rel (!%p459_p6) target bundleno = 229 (0xe5), region = 40 }
  0xd9   : > { %v438_v30 = vadd.f32 %v412_v28, %v325_v26  ;;  %v442_v31 = vadd.f32 %v424_v29, %v329_v27  ;;  %482 = vst [vmem:[%s914_s3 + $0x10] sm:$0xff] (%p459_p6), %v466_v34 }
  0xda   : > { %486 = vst [vmem:[%s914_s3 + $0x30] sm:$0xff] (%p459_p6), %v470_v38  ;;  %v474_v42 = vld [vmem:[#allocation2 + $0x10] sm:$0xff] (%p459_p6) }
  0xdb   : > { %454 = vst [vmem:[#allocation2 + $0x38] sm:$0xff] %v438_v30  ;;  %v478_v46 = vld [vmem:[#allocation2 + $0x78] sm:$0xff] (%p459_p6) }
  0xdc   : > { %458 = vst [vmem:[#allocation2 + $0x28] sm:$0xff] %v442_v31 }
  0xdd   : > { %490 = vst [vmem:[%s914_s3 + $0x50] sm:$0xff] %v474_v42 }
  0xde   : > { %v467_v35 = vld [vmem:[#allocation2 + $0x18] sm:$0xff]  ;;  %494 = vst [vmem:[%s914_s3 + $0x70] sm:$0xff] %v478_v46 }
  0xdf   : > { %483 = vst [vmem:[%s914_s3 + $0x18] sm:$0xff] %v467_v35  ;;  %v471_v39 = vld [vmem:[#allocation2 + $0x48] sm:$0xff] }
  0xe0   : > { %487 = vst [vmem:[%s914_s3 + $0x38] sm:$0xff] %v471_v39 }
  0xe2   : > { %v475_v43 = vld [vmem:[#allocation2 + $0x38] sm:$0xff] }
  0xe3   : > { %491 = vst [vmem:[%s914_s3 + $0x58] sm:$0xff] %v475_v43  ;;  %v479_v47 = vld [vmem:[#allocation2 + $0x28] sm:$0xff] }
  0xe4   : > { %495 = vst [vmem:[%s914_s3 + $0x78] sm:$0xff] %v479_v47 }
  0xe5 PF: > { %s13_s14 = sadd.s32 1, %s716_s14   ;;  %s915_s12 = smov %s712_s13 }
  0xe6   : > { %p10_p7 = scmp.ge.s32.totalorder %s13_s14, 4   ;;  %s916_s13 = smov %s918_s15 }
  0xe8   :  { %12 = sbr.rel (!%p10_p7) target bundleno = 2 (0x2), region = 76 }

// kernel: simple_tchebconv_forward.2
= control target key start
LH: loop header
LB: loop body
LE: loop exit
PB: predicated region body
PF: predicated region fallthrough
CT: control target
= control target key end

     0   :  { %vm46_vm0 = vcmask 261120   ;;  %s769_s1 = inlined_call_operand.vmem [shape: f32[32,128], index: 1, kind: input, shape index: {}]   ;;  %s770_s3 = inlined_call_operand.vmem [shape: f32[32,128], index: 3, kind: input, shape index: {}]   ;;  %s771_s2 = inlined_call_operand.vmem [shape: f32[32,128], index: 2, kind: input, shape index: {}]   ;;  %s772_s0 = inlined_call_operand.vmem [shape: f32[128,32], index: 0, kind: input, shape index: {}]   ;;  %s773_s4 = inlined_call_operand.vmem [shape: f32[1,128], index: 4, kind: input, shape index: {}]   ;;  %s774_s5 = inlined_call_operand.vmem [shape: f32[128,128], index: 5, kind: output, shape index: {0}]   ;;  %s775_s6 = inlined_call_operand.vmem [shape: f32[2,128,128], index: 6, kind: output, shape index: {1}]  }
   0x1   :  { %v41_v0 = vld [vmem:[%s769_s1 + $0x18] sm:$0xff]  ;;  %v40_v2 = vld [vmem:[%s769_s1 + $0x10] sm:$0xff]  ;;  %v39_v4 = vld [vmem:[%s769_s1 + $0x8] sm:$0xff] }
   0x2   :  { %v264_v1 = vld [vmem:[%s770_s3 + $0x18] sm:$0xff]  ;;  %419 = vmatpush.msra.mxu3 %v41_v0  ;;  %v263_v3 = vld [vmem:[%s770_s3 + $0x10] sm:$0xff]  ;;  %107 = vmatpush.msra.mxu0 %v41_v0  ;;  %v262_v5 = vld [vmem:[%s770_s3 + $0x8] sm:$0xff] }
   0x3   :  { %277 = vmatpush.msra.mxu2 %v264_v1  ;;  %v179_v6 = vld [vmem:[%s771_s2 + $0x18] sm:$0xff]  ;;  %v178_v7 = vld [vmem:[%s771_s2 + $0x10] sm:$0xff]  ;;  %v38_v8 = vld [vmem:[%s769_s1] sm:$0xff] }
   0x4   :  { %420 = vmatpush.msra.mxu3 %v40_v2  ;;  %108 = vmatpush.msra.mxu0 %v40_v2  ;;  %v261_v9 = vld [vmem:[%s770_s3] sm:$0xff]  ;;  %v177_v12 = vld [vmem:[%s771_s2 + $0x8] sm:$0xff]  ;;  %v36_v16 = vld [vmem:[%s772_s0 + $0x70] sm:$0xff] }
   0x5   :  { %278 = vmatpush.msra.mxu2 %v263_v3  ;;  %192 = vmatpush.msra.mxu1 %v179_v6  ;;  %v500_v10 = vld [vmem:[%s772_s0 + $0x60] sm:$0xff]  ;;  %v35_v14 = vld [vmem:[%s772_s0 + $0x68] sm:$0xff]  ;;  %v24_v17 = vld [vmem:[%s772_s0 + $0x10] sm:$0xff] }
   0x6   :  { %421 = vmatpush.msra.mxu3 %v39_v4  ;;  %v22_v11 = vld [vmem:[%s772_s0] sm:$0xff]  ;;  %109 = vmatpush.msra.mxu0 %v39_v4  ;;  %v23_v15 = vld [vmem:[%s772_s0 + $0x8] sm:$0xff]  ;;  %v37_v18 = vld [vmem:[%s772_s0 + $0x78] sm:$0xff] }
   0x7   :  { %279 = vmatpush.msra.mxu2 %v262_v5  ;;  %193 = vmatpush.msra.mxu1 %v178_v7  ;;  %v176_v13 = vld [vmem:[%s771_s2] sm:$0xff]  ;;  %v25_v19 = vld [vmem:[%s772_s0 + $0x18] sm:$0xff]  ;;  %v27_v21 = vld [vmem:[%s772_s0 + $0x28] sm:$0xff] }
   0x8   :  { %422 = vmatpush.msra.mxu3 %v38_v8  ;;  %110 = vmatpush.msra.mxu0 %v38_v8  ;;  %v26_v20 = vld [vmem:[%s772_s0 + $0x20] sm:$0xff]  ;;  %v28_v22 = vld [vmem:[%s772_s0 + $0x30] sm:$0xff]  ;;  %v29_v23 = vld [vmem:[%s772_s0 + $0x38] sm:$0xff] }
   0x9   :  { %280 = vmatpush.msra.mxu2 %v261_v9  ;;  %367 = vmatmul.msk.f32.vlgmr.msra.gmra.mxu3 %vm46_vm0, %v500_v10  ;;  %v30_v24 = vld [vmem:[%s772_s0 + $0x40] sm:$0xff]  ;;  %v31_v25 = vld [vmem:[%s772_s0 + $0x48] sm:$0xff]  ;;  %v32_v26 = vld [vmem:[%s772_s0 + $0x50] sm:$0xff] }
   0xa   :  { %387 = vmatmul.msk.f32.vlgmr.msra.gmra.mxu2 %vm46_vm0, %v22_v11  ;;  %423 = vmatpush.msrb.mxu3 %v179_v6  ;;  %v33_v27 = vld [vmem:[%s772_s0 + $0x58] sm:$0xff]  ;;  %v607_v28 = vld [vmem:[%s773_s4] ss:$0 sm:$0xff] }
   0xb   :  { %194 = vmatpush.msra.mxu1 %v177_v12  ;;  %355 = vmatmul.msk.f32.vlgmr.msra.gmra.mxu0 %vm46_vm0, %v22_v11 }
   0xc   :  { %424 = vmatpush.msrb.mxu3 %v178_v7 }
   0xd   :  { %195 = vmatpush.msra.mxu1 %v176_v13 }
   0xe   :  { %371 = vmatmul.msk.f32.vlgmr.msra.gmra.mxu1 %vm46_vm0, %v22_v11  ;;  %425 = vmatpush.msrb.mxu3 %v177_v12 }
  0x10   :  { %426 = vmatpush.msrb.mxu3 %v176_v13 }
  0x11   :  { %368 = vmatmul.msk.f32.gmra.mxu3 %vm46_vm0, %v35_v14 }
  0x12   :  { %388 = vmatmul.msk.f32.gmra.mxu2 %vm46_vm0, %v23_v15  ;;  %427 = vmatpush.msra.mxu3 %v264_v1 }
  0x13   :  { %356 = vmatmul.msk.f32.gmra.mxu0 %vm46_vm0, %v23_v15 }
  0x14   :  { %428 = vmatpush.msra.mxu3 %v263_v3 }
  0x16   :  { %372 = vmatmul.msk.f32.gmra.mxu1 %vm46_vm0, %v23_v15  ;;  %429 = vmatpush.msra.mxu3 %v262_v5 }
  0x18   :  { %430 = vmatpush.msra.mxu3 %v261_v9 }
  0x19   :  { %369 = vmatmul.msk.f32.gmra.mxu3 %vm46_vm0, %v36_v16 }
  0x1a   :  { %389 = vmatmul.msk.f32.gmra.mxu2 %vm46_vm0, %v24_v17 }
  0x1b   :  { %357 = vmatmul.msk.f32.gmra.mxu0 %vm46_vm0, %v24_v17 }
  0x1e   :  { %373 = vmatmul.msk.f32.gmra.mxu1 %vm46_vm0, %v24_v17 }
  0x21   :  { %370 = vmatmul.msk.f32.gmra.mxu3 %vm46_vm0, %v37_v18 }
  0x22   :  { %390 = vmatmul.msk.f32.gmra.mxu2 %vm46_vm0, %v25_v19 }
  0x23   :  { %358 = vmatmul.msk.f32.gmra.mxu0 %vm46_vm0, %v25_v19 }
  0x26   :  { %374 = vmatmul.msk.f32.gmra.mxu1 %vm46_vm0, %v25_v19 }
  0x29   :  { %383 = vmatmul.msk.f32.vlgmr.msrb.gmra.mxu3 %vm46_vm0, %v500_v10 }
  0x2a   :  { %391 = vmatmul.msk.f32.gmra.mxu2 %vm46_vm0, %v26_v20 }
  0x2b   :  { %359 = vmatmul.msk.f32.gmra.mxu0 %vm46_vm0, %v26_v20 }
  0x2e   :  { %375 = vmatmul.msk.f32.gmra.mxu1 %vm46_vm0, %v26_v20 }
  0x31   :  { %384 = vmatmul.msk.f32.gmra.mxu3 %vm46_vm0, %v35_v14 }
  0x32   :  { %392 = vmatmul.msk.f32.gmra.mxu2 %vm46_vm0, %v27_v21 }
  0x33   :  { %360 = vmatmul.msk.f32.gmra.mxu0 %vm46_vm0, %v27_v21 }
  0x36   :  { %376 = vmatmul.msk.f32.gmra.mxu1 %vm46_vm0, %v27_v21 }
  0x39   :  { %385 = vmatmul.msk.f32.gmra.mxu3 %vm46_vm0, %v36_v16 }
  0x3a   :  { %393 = vmatmul.msk.f32.gmra.mxu2 %vm46_vm0, %v28_v22 }
  0x3b   :  { %361 = vmatmul.msk.f32.gmra.mxu0 %vm46_vm0, %v28_v22 }
  0x3e   :  { %377 = vmatmul.msk.f32.gmra.mxu1 %vm46_vm0, %v28_v22 }
  0x41   :  { %386 = vmatmul.msk.f32.gmra.mxu3 %vm46_vm0, %v37_v18 }
  0x42   :  { %394 = vmatmul.msk.f32.gmra.mxu2 %vm46_vm0, %v29_v23 }
  0x43   :  { %362 = vmatmul.msk.f32.gmra.mxu0 %vm46_vm0, %v29_v23 }
  0x46   :  { %378 = vmatmul.msk.f32.gmra.mxu1 %vm46_vm0, %v29_v23 }
  0x49   :  { %399 = vmatmul.msk.f32.vlgmr.msra.gmra.mxu3 %vm46_vm0, %v500_v10 }
  0x4a   :  { %395 = vmatmul.msk.f32.gmra.mxu2 %vm46_vm0, %v30_v24 }
  0x4b   :  { %363 = vmatmul.msk.f32.gmra.mxu0 %vm46_vm0, %v30_v24 }
  0x4e   :  { %379 = vmatmul.msk.f32.gmra.mxu1 %vm46_vm0, %v30_v24 }
  0x51   :  { %400 = vmatmul.msk.f32.gmra.mxu3 %vm46_vm0, %v35_v14 }
  0x52   :  { %396 = vmatmul.msk.f32.gmra.mxu2 %vm46_vm0, %v31_v25 }
  0x53   :  { %364 = vmatmul.msk.f32.gmra.mxu0 %vm46_vm0, %v31_v25 }
  0x56   :  { %380 = vmatmul.msk.f32.gmra.mxu1 %vm46_vm0, %v31_v25 }
  0x59   :  { %401 = vmatmul.msk.f32.gmra.mxu3 %vm46_vm0, %v36_v16 }
  0x5a   :  { %397 = vmatmul.msk.f32.gmra.mxu2 %vm46_vm0, %v32_v26 }
  0x5b   :  { %365 = vmatmul.msk.f32.gmra.mxu0 %vm46_vm0, %v32_v26 }
  0x5e   :  { %381 = vmatmul.msk.f32.gmra.mxu1 %vm46_vm0, %v32_v26 }
  0x61   :  { %402 = vmatmul.msk.f32.gmra.mxu3 %vm46_vm0, %v37_v18 }
  0x62   :  { %398 = vmatmul.msk.f32.gmra.mxu2 %vm46_vm0, %v33_v27 }
  0x63   :  { %366 = vmatmul.msk.f32.gmra.mxu0 %vm46_vm0, %v33_v27 }
  0x66   :  { %382 = vmatmul.msk.f32.gmra.mxu1 %vm46_vm0, %v33_v27 }
  0x88   :  { %v112_v29 = vpop.f32.mrf.mxu0 }
  0x89   :  { %v113_v30 = vadd.f32 %v607_v28, %v112_v29 }
  0x8b   :  { %160 = vst [vmem:[%s774_s5] sm:$0xff] %v113_v30  ;;  %v197_v31 = vpop.f32.mrf.mxu1 }
  0x8c   :  { %v148_v32 = vpop.f32.mrf.mxu3  ;;  %245 = vst [vmem:[%s775_s6] sm:$0xff] %v197_v31 }
  0x8d   :  { %v282_v33 = vpop.f32.mrf.mxu2  ;;  %v149_v34 = vadd.f32 %v607_v28, %v148_v32 }
  0x8e   :  { %403 = vst [vmem:[%s775_s6 + $0x80] sm:$0xff] %v282_v33 }
  0x8f   :  { %172 = vst [vmem:[%s774_s5 + $0x60] sm:$0xff] %v149_v34 }
  0x90   :  { %v115_v35 = vpop.f32.mrf.mxu0 }
  0x91   :  { %v116_v36 = vadd.f32 %v607_v28, %v115_v35 }
  0x93   :  { %161 = vst [vmem:[%s774_s5 + $0x8] sm:$0xff] %v116_v36  ;;  %v200_v37 = vpop.f32.mrf.mxu1 }
  0x94   :  { %v151_v38 = vpop.f32.mrf.mxu3  ;;  %246 = vst [vmem:[%s775_s6 + $0x8] sm:$0xff] %v200_v37 }
  0x95   :  { %v285_v39 = vpop.f32.mrf.mxu2  ;;  %v152_v40 = vadd.f32 %v607_v28, %v151_v38 }
  0x96   :  { %404 = vst [vmem:[%s775_s6 + $0x88] sm:$0xff] %v285_v39 }
  0x97   :  { %173 = vst [vmem:[%s774_s5 + $0x68] sm:$0xff] %v152_v40 }
  0x98   :  { %v118_v41 = vpop.f32.mrf.mxu0 }
  0x99   :  { %v119_v42 = vadd.f32 %v607_v28, %v118_v41 }
  0x9b   :  { %162 = vst [vmem:[%s774_s5 + $0x10] sm:$0xff] %v119_v42  ;;  %v203_v43 = vpop.f32.mrf.mxu1 }
  0x9c   :  { %v154_v44 = vpop.f32.mrf.mxu3  ;;  %247 = vst [vmem:[%s775_s6 + $0x10] sm:$0xff] %v203_v43 }
  0x9d   :  { %v288_v45 = vpop.f32.mrf.mxu2  ;;  %v155_v46 = vadd.f32 %v607_v28, %v154_v44 }
  0x9e   :  { %405 = vst [vmem:[%s775_s6 + $0x90] sm:$0xff] %v288_v45 }
  0x9f   :  { %174 = vst [vmem:[%s774_s5 + $0x70] sm:$0xff] %v155_v46 }
  0xa0   :  { %v121_v47 = vpop.f32.mrf.mxu0 }
  0xa1   :  { %v122_v48 = vadd.f32 %v607_v28, %v121_v47 }
  0xa3   :  { %163 = vst [vmem:[%s774_s5 + $0x18] sm:$0xff] %v122_v48  ;;  %v206_v49 = vpop.f32.mrf.mxu1 }
  0xa4   :  { %v157_v50 = vpop.f32.mrf.mxu3  ;;  %248 = vst [vmem:[%s775_s6 + $0x18] sm:$0xff] %v206_v49 }
  0xa5   :  { %v291_v51 = vpop.f32.mrf.mxu2  ;;  %v158_v52 = vadd.f32 %v607_v28, %v157_v50 }
  0xa6   :  { %406 = vst [vmem:[%s775_s6 + $0x98] sm:$0xff] %v291_v51 }
  0xa7   :  { %175 = vst [vmem:[%s774_s5 + $0x78] sm:$0xff] %v158_v52 }
  0xa8   :  { %v124_v53 = vpop.f32.mrf.mxu0 }
  0xa9   :  { %v125_v54 = vadd.f32 %v607_v28, %v124_v53 }
  0xab   :  { %164 = vst [vmem:[%s774_s5 + $0x20] sm:$0xff] %v125_v54  ;;  %v209_v55 = vpop.f32.mrf.mxu1 }
  0xac   :  { %249 = vst [vmem:[%s775_s6 + $0x20] sm:$0xff] %v209_v55  ;;  %v233_v56 = vpop.f32.mrf.mxu3 }
  0xad   :  { %v294_v57 = vpop.f32.mrf.mxu2  ;;  %257 = vst [vmem:[%s775_s6 + $0x60] sm:$0xff] %v233_v56 }
  0xae   :  { %407 = vst [vmem:[%s775_s6 + $0xa0] sm:$0xff] %v294_v57 }
  0xb0   :  { %v127_v58 = vpop.f32.mrf.mxu0 }
  0xb1   :  { %v128_v59 = vadd.f32 %v607_v28, %v127_v58 }
  0xb3   :  { %165 = vst [vmem:[%s774_s5 + $0x28] sm:$0xff] %v128_v59  ;;  %v212_v60 = vpop.f32.mrf.mxu1 }
  0xb4   :  { %250 = vst [vmem:[%s775_s6 + $0x28] sm:$0xff] %v212_v60  ;;  %v236_v61 = vpop.f32.mrf.mxu3 }
  0xb5   :  { %v297_v62 = vpop.f32.mrf.mxu2  ;;  %258 = vst [vmem:[%s775_s6 + $0x68] sm:$0xff] %v236_v61 }
  0xb6   :  { %408 = vst [vmem:[%s775_s6 + $0xa8] sm:$0xff] %v297_v62 }
  0xb8   :  { %v130_v63 = vpop.f32.mrf.mxu0 }
  0xb9   :  { %v131_v0 = vadd.f32 %v607_v28, %v130_v63 }
  0xbb   :  { %166 = vst [vmem:[%s774_s5 + $0x30] sm:$0xff] %v131_v0  ;;  %v215_v1 = vpop.f32.mrf.mxu1 }
  0xbc   :  { %251 = vst [vmem:[%s775_s6 + $0x30] sm:$0xff] %v215_v1  ;;  %v239_v2 = vpop.f32.mrf.mxu3 }
  0xbd   :  { %v300_v3 = vpop.f32.mrf.mxu2  ;;  %259 = vst [vmem:[%s775_s6 + $0x70] sm:$0xff] %v239_v2 }
  0xbe   :  { %409 = vst [vmem:[%s775_s6 + $0xb0] sm:$0xff] %v300_v3 }
  0xc0   :  { %v133_v4 = vpop.f32.mrf.mxu0 }
  0xc1   :  { %v134_v5 = vadd.f32 %v607_v28, %v133_v4 }
  0xc3   :  { %167 = vst [vmem:[%s774_s5 + $0x38] sm:$0xff] %v134_v5  ;;  %v218_v6 = vpop.f32.mrf.mxu1 }
  0xc4   :  { %252 = vst [vmem:[%s775_s6 + $0x38] sm:$0xff] %v218_v6  ;;  %v242_v7 = vpop.f32.mrf.mxu3 }
  0xc5   :  { %v303_v8 = vpop.f32.mrf.mxu2  ;;  %260 = vst [vmem:[%s775_s6 + $0x78] sm:$0xff] %v242_v7 }
  0xc6   :  { %410 = vst [vmem:[%s775_s6 + $0xb8] sm:$0xff] %v303_v8 }
  0xc8   :  { %v136_v9 = vpop.f32.mrf.mxu0 }
  0xc9   :  { %v137_v10 = vadd.f32 %v607_v28, %v136_v9 }
  0xcb   :  { %168 = vst [vmem:[%s774_s5 + $0x40] sm:$0xff] %v137_v10  ;;  %v221_v11 = vpop.f32.mrf.mxu1 }
  0xcc   :  { %253 = vst [vmem:[%s775_s6 + $0x40] sm:$0xff] %v221_v11  ;;  %v318_v13 = vpop.f32.mrf.mxu3 }
  0xcd   :  { %v306_v12 = vpop.f32.mrf.mxu2  ;;  %415 = vst [vmem:[%s775_s6 + $0xe0] sm:$0xff] %v318_v13 }
  0xce   :  { %411 = vst [vmem:[%s775_s6 + $0xc0] sm:$0xff] %v306_v12 }
  0xd0   :  { %v139_v14 = vpop.f32.mrf.mxu0 }
  0xd1   :  { %v140_v15 = vadd.f32 %v607_v28, %v139_v14 }
  0xd3   :  { %169 = vst [vmem:[%s774_s5 + $0x48] sm:$0xff] %v140_v15  ;;  %v224_v16 = vpop.f32.mrf.mxu1 }
  0xd4   :  { %254 = vst [vmem:[%s775_s6 + $0x48] sm:$0xff] %v224_v16  ;;  %v321_v18 = vpop.f32.mrf.mxu3 }
  0xd5   :  { %v309_v17 = vpop.f32.mrf.mxu2  ;;  %416 = vst [vmem:[%s775_s6 + $0xe8] sm:$0xff] %v321_v18 }
  0xd6   :  { %412 = vst [vmem:[%s775_s6 + $0xc8] sm:$0xff] %v309_v17 }
  0xd8   :  { %v142_v19 = vpop.f32.mrf.mxu0 }
  0xd9   :  { %v143_v20 = vadd.f32 %v607_v28, %v142_v19 }
  0xdb   :  { %170 = vst [vmem:[%s774_s5 + $0x50] sm:$0xff] %v143_v20  ;;  %v227_v21 = vpop.f32.mrf.mxu1 }
  0xdc   :  { %255 = vst [vmem:[%s775_s6 + $0x50] sm:$0xff] %v227_v21  ;;  %v324_v23 = vpop.f32.mrf.mxu3 }
  0xdd   :  { %v312_v22 = vpop.f32.mrf.mxu2  ;;  %417 = vst [vmem:[%s775_s6 + $0xf0] sm:$0xff] %v324_v23 }
  0xde   :  { %413 = vst [vmem:[%s775_s6 + $0xd0] sm:$0xff] %v312_v22 }
  0xe0   :  { %v145_v24 = vpop.f32.mrf.mxu0 }
  0xe1   :  { %v146_v25 = vadd.f32 %v607_v28, %v145_v24 }
  0xe3   :  { %171 = vst [vmem:[%s774_s5 + $0x58] sm:$0xff] %v146_v25  ;;  %v230_v26 = vpop.f32.mrf.mxu1 }
  0xe4   :  { %256 = vst [vmem:[%s775_s6 + $0x58] sm:$0xff] %v230_v26  ;;  %v327_v29 = vpop.f32.mrf.mxu3 }
  0xe5   :  { %v315_v27 = vpop.f32.mrf.mxu2  ;;  %418 = vst [vmem:[%s775_s6 + $0xf8] sm:$0xff] %v327_v29 }
  0xe6   :  { %414 = vst [vmem:[%s775_s6 + $0xd8] sm:$0xff] %v315_v27 }

</bundles_post_ra>
